<compile_context>
chip_gen: v6e
topology: v6e:2x2x1
jax: 0.10.0
libtpu: 0.0.40
codegen_flags: <defaults>
</compile_context>

<pallas_src>
import functools

import jax
import jax.numpy as jnp
from jax import lax
from jax.experimental import pallas as pl
from jax.experimental.pallas import tpu as pltpu


def _round_up(x, m):
    return ((x + m - 1) // m) * m


def _vmem_capacity_bytes():
    try:
        return int(pltpu.get_tpu_info().vmem_capacity_bytes)
    except Exception:
        return 64 * 1024 * 1024  # conservative fallback (v7x-sized)


def _invariant_spec_kwargs():
    """Single-buffer kwargs for loop-invariant operands (probe-guarded)."""
    try:
        pl.BlockSpec((8, 128), lambda i: (0, 0), pipeline_mode=pl.Buffered(1))
        return dict(pipeline_mode=pl.Buffered(1))
    except Exception:
        return {}


def _pick_batch_block(batch, s8, to8, t_out, c_in, c_out, k_taps, n_groups,
                      in_itemsize, budget):
    """Largest Bb (divisor of batch; <= batch//2 when batch >= 2 so both v7x
    TensorCores get a grid step) whose full per-step VMEM footprint fits."""

    def step_bytes(bb):
        x_blk = 2 * bb * s8 * c_in * in_itemsize            # input, double buffered
        o_blk = 2 * bb * c_out * t_out * 4                  # output, double buffered
        invariants = (k_taps * c_in * c_out * in_itemsize   # weight (single buffer)
                      + 3 * c_out * 4                        # bias/gamma/beta
                      + 2 * n_groups * c_out * 4)            # group one-hots
        # live f32 temporaries (z/d/y/e/num/den/inv + transposed copy) plus the
        # per-tap lhs slice.
        temps = 8 * bb * to8 * c_out * 4 + 2 * bb * to8 * c_in * in_itemsize
        return x_blk + o_blk + invariants + temps

    divisors = [d for d in range(1, batch + 1) if batch % d == 0]
    if batch >= 2:
        divisors = [d for d in divisors if d <= batch // 2]
    fitting = [d for d in divisors if step_bytes(d) <= budget]
    bb = max(fitting) if fitting else min(divisors)
    return bb, step_bytes(bb)


def _diffusion_block_kernel(x_ref, w_ref, side_ref, gcg_ref, ggc_ref, o_ref):
    # x_ref:    (Bb, S8, C_in)    channels-last, zero-padded input window
    # w_ref:    (K, C_in, C_out)  conv weight, one (C_in, C_out) slice per tap
    # side_ref: (3, C_out)        packed [conv bias; GN gamma; GN beta]
    # gcg_ref:  (C_out, G)        one-hot channel -> group (reduce)
    # ggc_ref:  (G, C_out)        one-hot group -> channel (scatter)
    # o_ref:    (Bb, C_out, T_out)
    f32 = jnp.float32
    bb, _, c_in = x_ref.shape
    k_taps, _, c_out = w_ref.shape
    n_groups = ggc_ref.shape[0]
    t_out = o_ref.shape[2]
    to8 = _round_up(t_out, 8)          # time rows actually computed per batch
    m = bb * to8

    # ---- Conv1d: K shifted per-tap matmuls, f32 accumulation -------------
    # lhs (Bb*To8, C_in) / rhs (C_in, C_out) is the natural MXU layout; all
    # shifted tap windows come from the single VMEM block, so the input HBM
    # bytes are read exactly once (no im2col replication).
    def tap(k):
        xk = x_ref[:, k:k + to8, :].reshape(m, c_in)
        return jnp.dot(xk, w_ref[k], preferred_element_type=f32)

    z = tap(0)
    for k in range(1, k_taps):          # static unroll over taps
        z = z + tap(k)
    z = z.reshape(bb, to8, c_out)       # (Bb, To8, C_out), channels on lanes

    bias = side_ref[0:1, :].astype(f32)     # (1, C_out)
    gamma = side_ref[1:2, :].astype(f32)
    beta = side_ref[2:3, :].astype(f32)
    gcg = gcg_ref[...]                      # (C_out, G)
    ggc = ggc_ref[...]                      # (G, C_out)

    valid = None
    if to8 != t_out:                        # mask padded time rows out of stats
        t_idx = lax.broadcasted_iota(jnp.int32, (1, to8, 1), 1)
        valid = t_idx < t_out
        z = jnp.where(valid, z, 0.0)

    # ---- GroupNorm (two-pass variance; conv bias folded analytically) ----
    n_t = float(t_out)
    n_grp = float(c_out // n_groups) * n_t
    s_c = jnp.sum(z, axis=1)                                        # (Bb, C_out)
    s_g = jnp.dot(s_c, gcg, preferred_element_type=f32)             # (Bb, G)
    bias_g = jnp.dot(bias, gcg, preferred_element_type=f32)         # (1, G)
    mean_g = (s_g + bias_g * n_t) / n_grp                           # (Bb, G)
    mean_c = jnp.dot(mean_g, ggc, preferred_element_type=f32)       # (Bb, C_out)

    d = z + (bias - mean_c)[:, None, :]     # centered: z + bias - mean
    if valid is not None:
        d = jnp.where(valid, d, 0.0)
    ss_c = jnp.sum(d * d, axis=1)                                   # (Bb, C_out)
    var_g = jnp.dot(ss_c, gcg, preferred_element_type=f32) / n_grp  # (Bb, G)
    inv_g = lax.rsqrt(var_g + 1e-5)
    inv_c = jnp.dot(inv_g, ggc, preferred_element_type=f32)         # (Bb, C_out)

    a = gamma * inv_c                                               # (Bb, C_out)
    y = d * a[:, None, :] + beta[:, None, :]                        # (Bb, To8, C_out)

    # ---- Mish: y * tanh(softplus(y)) with a single EUP exp ---------------
    # tanh(log1p(e)) == e*(e+2) / (e*(e+2) + 2)
    e = jnp.exp(jnp.minimum(y, 20.0))
    num = e * (e + 2.0)
    den = num + 2.0
    inv = pl.reciprocal(den, approx=True)
    inv = inv * (2.0 - den * inv)           # one Newton step (VALU only)
    out = jnp.where(y > 20.0, y, y * (num * inv))

    # ---- per-batch (T, C) -> (C, T) reshuffle in-kernel, then store ------
    out = jnp.swapaxes(out, 1, 2)           # (Bb, C_out, To8), XLU transpose
    o_ref[...] = out[:, :, :t_out].astype(o_ref.dtype)


@functools.partial(jax.jit, static_argnames=("n_groups", "compute_dtype"))
def diffusion_conv1d_block(x, weight, bias, gamma, beta, n_groups,
                           compute_dtype=jnp.bfloat16):
    """x: (B, C_in, T); weight: (C_out, C_in, K); bias/gamma/beta: (C_out,).

    Returns (B, C_out, T_out) float32, matching
    nn.Conv1d(padding=K//2) -> nn.GroupNorm(n_groups) -> nn.Mish().
    compute_dtype=jnp.bfloat16 (default, full-rate MXU) quantizes only the
    conv operands; accumulation and all GroupNorm/Mish math stay in f32.
    compute_dtype=jnp.float32 is the exact-parity mode.
    """
    B, C_in, T = x.shape
    C_out, _, K = weight.shape
    G = n_groups
    assert C_out % G == 0, "GroupNorm requires C_out % n_groups == 0"
    pad = K // 2
    T_out = T + 2 * pad - K + 1          # == T for odd K
    To8 = _round_up(T_out, 8)            # computed time rows (sublane aligned)
    S8 = _round_up(To8 + K - 1, 8)       # padded channels-last time extent

    in_isz = jnp.dtype(compute_dtype).itemsize
    cap = _vmem_capacity_bytes()
    Bb, need = _pick_batch_block(B, S8, To8, T_out, C_in, C_out, K, G,
                                 in_isz, budget=int(cap * 0.6))
    vmem_limit = int(min(cap, max(int(cap * 0.75), need + (4 << 20))))

    # ---- wrapper-side layout plumbing (one XLA pass over x, no K-fold) ----
    # Channels-last + zero padding: time rows [0, pad) and [T+pad, S8) are
    # zeros, so every in-kernel tap window is already in the natural
    # (M=time, K=C_in) MXU layout and padded rows contribute exactly 0.
    x_cl = jnp.pad(x, ((0, 0), (0, 0), (pad, S8 - T - pad)))
    x_cl = x_cl.transpose(0, 2, 1).astype(compute_dtype)       # (B, S8, C_in)
    w_t = weight.transpose(2, 1, 0).astype(compute_dtype)      # (K, C_in, C_out)
    side = jnp.stack([bias, gamma, beta], axis=0).astype(jnp.float32)  # (3, C_out)
    group_ids = jnp.arange(C_out) // (C_out // G)
    gcg = (group_ids[:, None] == jnp.arange(G)[None, :]).astype(jnp.float32)
    ggc = gcg.T                                                 # (G, C_out)

    inv_kwargs = _invariant_spec_kwargs()   # single-buffer grid-invariant operands

    out = pl.pallas_call(
        _diffusion_block_kernel,
        out_shape=jax.ShapeDtypeStruct((B, C_out, T_out), jnp.float32),
        grid_spec=pltpu.PrefetchScalarGridSpec(
            num_scalar_prefetch=0,
            grid=(B // Bb,),
            in_specs=[
                pl.BlockSpec((Bb, S8, C_in), lambda i: (i, 0, 0)),
                pl.BlockSpec((K, C_in, C_out), lambda i: (0, 0, 0), **inv_kwargs),
                pl.BlockSpec((3, C_out), lambda i: (0, 0), **inv_kwargs),
                pl.BlockSpec((C_out, G), lambda i: (0, 0), **inv_kwargs),
                pl.BlockSpec((G, C_out), lambda i: (0, 0), **inv_kwargs),
            ],
            out_specs=pl.BlockSpec((Bb, C_out, T_out), lambda i: (i, 0, 0)),
        ),
        compiler_params=pltpu.CompilerParams(
            dimension_semantics=("parallel",),
            vmem_limit_bytes=vmem_limit),
    )(x_cl, w_t, side, gcg, ggc)
    return out


def _reference(x, weight, bias, gamma, beta, n_groups):
    """Pure-JAX reference matching PyTorch Conv1d -> GroupNorm -> Mish."""
    K = weight.shape[2]
    pad = K // 2
    y = lax.conv_general_dilated(
        x, weight, window_strides=(1,), padding=[(pad, pad)],
        dimension_numbers=("NCH", "OIH", "NCH"))
    y = y + bias[None, :, None]
    B, C, T = y.shape
    G = n_groups
    yg = y.reshape(B, G, (C // G) * T)
    mean = yg.mean(axis=-1, keepdims=True)
    var = yg.var(axis=-1, keepdims=True)
    yg = (yg - mean) / jnp.sqrt(var + 1e-5)
    y = yg.reshape(B, C, T) * gamma[None, :, None] + beta[None, :, None]
    return y * jnp.tanh(jax.nn.softplus(y))


if __name__ == "__main__":
    B, C_in, C_out, K, T, G = 2, 4, 16, 3, 16, 8

    key = jax.random.PRNGKey(0)
    k_x, k_w, k_b = jax.random.split(key, 3)
    x = jax.random.normal(k_x, (B, C_in, T), dtype=jnp.float32)

    # Deterministic parameter init (PyTorch-style uniform bounds for conv).
    fan_in = C_in * K
    bound = 1.0 / jnp.sqrt(float(fan_in))
    weight = jax.random.uniform(k_w, (C_out, C_in, K), jnp.float32, -bound, bound)
    bias = jax.random.uniform(k_b, (C_out,), jnp.float32, -bound, bound)
    gamma = jnp.ones((C_out,), jnp.float32)   # GroupNorm default weight
    beta = jnp.zeros((C_out,), jnp.float32)   # GroupNorm default bias

    ref = _reference(x, weight, bias, gamma, beta, G)

    # Exact-parity path (f32 conv operands).
    out_f32 = diffusion_conv1d_block(x, weight, bias, gamma, beta, G,
                                     compute_dtype=jnp.float32)
    out_f32 = jax.block_until_ready(out_f32)
    assert out_f32.shape == ref.shape == (B, C_out, T), out_f32.shape
    assert jnp.allclose(out_f32, ref, atol=1e-4, rtol=1e-4), \
        float(jnp.max(jnp.abs(out_f32 - ref)))

    # Performance default: bf16 conv operands, f32 accumulation + f32 GN/Mish.
    out_bf16 = diffusion_conv1d_block(x, weight, bias, gamma, beta, G)
    out_bf16 = jax.block_until_ready(out_bf16)
    assert out_bf16.shape == (B, C_out, T), out_bf16.shape
    assert jnp.allclose(out_bf16, ref, atol=5e-2, rtol=5e-2), \
        float(jnp.max(jnp.abs(out_bf16 - ref)))

    print("KERNEL_OK")
</pallas_src>

<mosaic_0001>
module attributes {stable_mosaic.version = 11 : i64} {
  func.func @_diffusion_block_kernel(%arg0: i32, %arg1: memref<1x24x4xf32, #tpu.memory_space<vmem>>, %arg2: memref<3x4x16xf32, #tpu.memory_space<vmem>>, %arg3: memref<3x16xf32, #tpu.memory_space<vmem>>, %arg4: memref<16x8xf32, #tpu.memory_space<vmem>>, %arg5: memref<8x16xf32, #tpu.memory_space<vmem>>, %arg6: memref<1x16x16xf32, #tpu.memory_space<vmem>>) attributes {dimension_semantics = [#tpu.dimension_semantics<parallel>], iteration_bounds = array<i64: 2>, scalar_prefetch = 0 : i64, scratch_operands = 0 : i64, tpu.core_type = #tpu.core_type<tc>, window_params = [{transform_indices = @transform_0, window_bounds = array<i64: 1, 24, 4>}, {pipeline_mode = #tpu.pipeline_mode<synchronous>, transform_indices = @transform_1, window_bounds = array<i64: 3, 4, 16>}, {pipeline_mode = #tpu.pipeline_mode<synchronous>, transform_indices = @transform_2, window_bounds = array<i64: 3, 16>}, {pipeline_mode = #tpu.pipeline_mode<synchronous>, transform_indices = @transform_3, window_bounds = array<i64: 16, 8>}, {pipeline_mode = #tpu.pipeline_mode<synchronous>, transform_indices = @transform_4, window_bounds = array<i64: 8, 16>}, {transform_indices = @transform_5, window_bounds = array<i64: 1, 16, 16>}]} {
    %c0 = arith.constant 0 : index
    %c0_0 = arith.constant 0 : index
    %c0_1 = arith.constant 0 : index
    %0 = vector.load %arg1[%c0, %c0_0, %c0_1] : memref<1x24x4xf32, #tpu.memory_space<vmem>>, vector<1x16x4xf32>
    %1 = vector.shape_cast %0 : vector<1x16x4xf32> to vector<16x4xf32>
    %c0_2 = arith.constant 0 : index
    %c0_3 = arith.constant 0 : index
    %c0_4 = arith.constant 0 : index
    %2 = vector.load %arg2[%c0_2, %c0_3, %c0_4] : memref<3x4x16xf32, #tpu.memory_space<vmem>>, vector<1x4x16xf32>
    %3 = vector.shape_cast %2 : vector<1x4x16xf32> to vector<4x16xf32>
    %cst = arith.constant dense<0.000000e+00> : vector<16x16xf32>
    %4 = tpu.matmul %1, %3, %cst {dimension_numbers = #tpu.dot_dimension_numbers<[1], [0], [0], [1], [0, 0, 1, 1], [], []>} : vector<16x4xf32>, vector<4x16xf32>, vector<16x16xf32> -> vector<16x16xf32>
    %c0_5 = arith.constant 0 : index
    %c1 = arith.constant 1 : index
    %c0_6 = arith.constant 0 : index
    %5 = vector.load %arg1[%c0_5, %c1, %c0_6] : memref<1x24x4xf32, #tpu.memory_space<vmem>>, vector<1x16x4xf32>
    %6 = vector.shape_cast %5 : vector<1x16x4xf32> to vector<16x4xf32>
    %c1_7 = arith.constant 1 : index
    %c0_8 = arith.constant 0 : index
    %c0_9 = arith.constant 0 : index
    %7 = vector.load %arg2[%c1_7, %c0_8, %c0_9] : memref<3x4x16xf32, #tpu.memory_space<vmem>>, vector<1x4x16xf32>
    %8 = vector.shape_cast %7 : vector<1x4x16xf32> to vector<4x16xf32>
    %cst_10 = arith.constant dense<0.000000e+00> : vector<16x16xf32>
    %9 = tpu.matmul %6, %8, %cst_10 {dimension_numbers = #tpu.dot_dimension_numbers<[1], [0], [0], [1], [0, 0, 1, 1], [], []>} : vector<16x4xf32>, vector<4x16xf32>, vector<16x16xf32> -> vector<16x16xf32>
    %10 = arith.addf %4, %9 : vector<16x16xf32>
    %c0_11 = arith.constant 0 : index
    %c2 = arith.constant 2 : index
    %c0_12 = arith.constant 0 : index
    %11 = vector.load %arg1[%c0_11, %c2, %c0_12] : memref<1x24x4xf32, #tpu.memory_space<vmem>>, vector<1x16x4xf32>
    %12 = vector.shape_cast %11 : vector<1x16x4xf32> to vector<16x4xf32>
    %c2_13 = arith.constant 2 : index
    %c0_14 = arith.constant 0 : index
    %c0_15 = arith.constant 0 : index
    %13 = vector.load %arg2[%c2_13, %c0_14, %c0_15] : memref<3x4x16xf32, #tpu.memory_space<vmem>>, vector<1x4x16xf32>
    %14 = vector.shape_cast %13 : vector<1x4x16xf32> to vector<4x16xf32>
    %cst_16 = arith.constant dense<0.000000e+00> : vector<16x16xf32>
    %15 = tpu.matmul %12, %14, %cst_16 {dimension_numbers = #tpu.dot_dimension_numbers<[1], [0], [0], [1], [0, 0, 1, 1], [], []>} : vector<16x4xf32>, vector<4x16xf32>, vector<16x16xf32> -> vector<16x16xf32>
    %16 = arith.addf %10, %15 : vector<16x16xf32>
    %17 = vector.shape_cast %16 : vector<16x16xf32> to vector<1x16x16xf32>
    %c0_17 = arith.constant 0 : index
    %c0_18 = arith.constant 0 : index
    %18 = vector.load %arg3[%c0_17, %c0_18] : memref<3x16xf32, #tpu.memory_space<vmem>>, vector<1x16xf32>
    %c1_19 = arith.constant 1 : index
    %c0_20 = arith.constant 0 : index
    %19 = vector.load %arg3[%c1_19, %c0_20] : memref<3x16xf32, #tpu.memory_space<vmem>>, vector<1x16xf32>
    %c2_21 = arith.constant 2 : index
    %c0_22 = arith.constant 0 : index
    %20 = vector.load %arg3[%c2_21, %c0_22] : memref<3x16xf32, #tpu.memory_space<vmem>>, vector<1x16xf32>
    %c0_23 = arith.constant 0 : index
    %c0_24 = arith.constant 0 : index
    %21 = vector.load %arg4[%c0_23, %c0_24] : memref<16x8xf32, #tpu.memory_space<vmem>>, vector<16x8xf32>
    %c0_25 = arith.constant 0 : index
    %c0_26 = arith.constant 0 : index
    %22 = vector.load %arg5[%c0_25, %c0_26] : memref<8x16xf32, #tpu.memory_space<vmem>>, vector<8x16xf32>
    %cst_27 = arith.constant dense<0.000000e+00> : vector<1x16xf32>
    %23 = vector.multi_reduction <add>, %17, %cst_27 [1] : vector<1x16x16xf32> to vector<1x16xf32>
    %cst_28 = arith.constant dense<0.000000e+00> : vector<1x8xf32>
    %24 = tpu.matmul %23, %21, %cst_28 {dimension_numbers = #tpu.dot_dimension_numbers<[1], [0], [0], [1], [0, 0, 1, 1], [], []>} : vector<1x16xf32>, vector<16x8xf32>, vector<1x8xf32> -> vector<1x8xf32>
    %cst_29 = arith.constant dense<0.000000e+00> : vector<1x8xf32>
    %25 = tpu.matmul %18, %21, %cst_29 {dimension_numbers = #tpu.dot_dimension_numbers<[1], [0], [0], [1], [0, 0, 1, 1], [], []>} : vector<1x16xf32>, vector<16x8xf32>, vector<1x8xf32> -> vector<1x8xf32>
    %cst_30 = arith.constant 1.600000e+01 : f32
    %26 = vector.broadcast %cst_30 : f32 to vector<1x8xf32>
    %27 = arith.mulf %25, %26 : vector<1x8xf32>
    %28 = arith.addf %24, %27 : vector<1x8xf32>
    %cst_31 = arith.constant 3.200000e+01 : f32
    %29 = vector.broadcast %cst_31 : f32 to vector<1x8xf32>
    %30 = arith.divf %28, %29 : vector<1x8xf32>
    %cst_32 = arith.constant dense<0.000000e+00> : vector<1x16xf32>
    %31 = tpu.matmul %30, %22, %cst_32 {dimension_numbers = #tpu.dot_dimension_numbers<[1], [0], [0], [1], [0, 0, 1, 1], [], []>} : vector<1x8xf32>, vector<8x16xf32>, vector<1x16xf32> -> vector<1x16xf32>
    %32 = arith.subf %18, %31 : vector<1x16xf32>
    %33 = vector.shape_cast %32 : vector<1x16xf32> to vector<1x1x16xf32>
    %34 = vector.broadcast %33 : vector<1x1x16xf32> to vector<1x16x16xf32>
    %35 = arith.addf %17, %34 : vector<1x16x16xf32>
    %36 = arith.mulf %35, %35 : vector<1x16x16xf32>
    %cst_33 = arith.constant dense<0.000000e+00> : vector<1x16xf32>
    %37 = vector.multi_reduction <add>, %36, %cst_33 [1] : vector<1x16x16xf32> to vector<1x16xf32>
    %cst_34 = arith.constant dense<0.000000e+00> : vector<1x8xf32>
    %38 = tpu.matmul %37, %21, %cst_34 {dimension_numbers = #tpu.dot_dimension_numbers<[1], [0], [0], [1], [0, 0, 1, 1], [], []>} : vector<1x16xf32>, vector<16x8xf32>, vector<1x8xf32> -> vector<1x8xf32>
    %cst_35 = arith.constant 3.200000e+01 : f32
    %39 = vector.broadcast %cst_35 : f32 to vector<1x8xf32>
    %40 = arith.divf %38, %39 : vector<1x8xf32>
    %cst_36 = arith.constant 9.99999974E-6 : f32
    %41 = vector.broadcast %cst_36 : f32 to vector<1x8xf32>
    %42 = arith.addf %40, %41 : vector<1x8xf32>
    %43 = math.rsqrt %42 : vector<1x8xf32>
    %cst_37 = arith.constant dense<0.000000e+00> : vector<1x16xf32>
    %44 = tpu.matmul %43, %22, %cst_37 {dimension_numbers = #tpu.dot_dimension_numbers<[1], [0], [0], [1], [0, 0, 1, 1], [], []>} : vector<1x8xf32>, vector<8x16xf32>, vector<1x16xf32> -> vector<1x16xf32>
    %45 = arith.mulf %19, %44 : vector<1x16xf32>
    %46 = vector.shape_cast %45 : vector<1x16xf32> to vector<1x1x16xf32>
    %47 = vector.broadcast %46 : vector<1x1x16xf32> to vector<1x16x16xf32>
    %48 = arith.mulf %35, %47 : vector<1x16x16xf32>
    %49 = vector.shape_cast %20 : vector<1x16xf32> to vector<1x1x16xf32>
    %50 = vector.broadcast %49 : vector<1x1x16xf32> to vector<1x16x16xf32>
    %51 = arith.addf %48, %50 : vector<1x16x16xf32>
    %cst_38 = arith.constant 2.000000e+01 : f32
    %52 = vector.broadcast %cst_38 : f32 to vector<1x16x16xf32>
    %53 = arith.minimumf %51, %52 : vector<1x16x16xf32>
    %54 = math.exp %53 : vector<1x16x16xf32>
    %cst_39 = arith.constant 2.000000e+00 : f32
    %55 = vector.broadcast %cst_39 : f32 to vector<1x16x16xf32>
    %56 = arith.addf %54, %55 : vector<1x16x16xf32>
    %57 = arith.mulf %54, %56 : vector<1x16x16xf32>
    %cst_40 = arith.constant 2.000000e+00 : f32
    %58 = vector.broadcast %cst_40 : f32 to vector<1x16x16xf32>
    %59 = arith.addf %57, %58 : vector<1x16x16xf32>
    %60 = tpu.reciprocal %59 {approx = true} : vector<1x16x16xf32> -> vector<1x16x16xf32>
    %61 = arith.mulf %59, %60 : vector<1x16x16xf32>
    %cst_41 = arith.constant 2.000000e+00 : f32
    %62 = vector.broadcast %cst_41 : f32 to vector<1x16x16xf32>
    %63 = arith.subf %62, %61 : vector<1x16x16xf32>
    %64 = arith.mulf %60, %63 : vector<1x16x16xf32>
    %cst_42 = arith.constant 2.000000e+01 : f32
    %65 = vector.broadcast %cst_42 : f32 to vector<1x16x16xf32>
    %66 = arith.cmpf ogt, %51, %65 : vector<1x16x16xf32>
    %67 = arith.mulf %57, %64 : vector<1x16x16xf32>
    %68 = arith.mulf %51, %67 : vector<1x16x16xf32>
    %69 = arith.select %66, %51, %68 : vector<1x16x16xi1>, vector<1x16x16xf32>
    %70 = tpu.transpose %69, [0, 2, 1] : vector<1x16x16xf32> -> vector<1x16x16xf32>
    %c0_43 = arith.constant 0 : index
    %c0_44 = arith.constant 0 : index
    %c0_45 = arith.constant 0 : index
    %71 = vector.load %arg6[%c0_43, %c0_44, %c0_45] : memref<1x16x16xf32, #tpu.memory_space<vmem>>, vector<1x16x16xf32>
    tpu.vector_store %arg6[%c0_43, %c0_44, %c0_45], %70 {strides = array<i32>} : memref<1x16x16xf32, #tpu.memory_space<vmem>>, vector<1x16x16xf32>,
    return
  }
  func.func @transform_0(%arg0: i32) -> (i32, i32, i32) {
    %c0_i32 = arith.constant 0 : i32
    %c0_i32_0 = arith.constant 0 : i32
    %c0_i32_1 = arith.constant 0 : i32
    return %arg0, %c0_i32, %c0_i32_0 : i32, i32, i32
  }
  func.func @transform_1(%arg0: i32) -> (i32, i32, i32) {
    %c0_i32 = arith.constant 0 : i32
    %c0_i32_0 = arith.constant 0 : i32
    %c0_i32_1 = arith.constant 0 : i32
    %c0_i32_2 = arith.constant 0 : i32
    return %c0_i32, %c0_i32_0, %c0_i32_1 : i32, i32, i32
  }
  func.func @transform_2(%arg0: i32) -> (i32, i32) {
    %c0_i32 = arith.constant 0 : i32
    %c0_i32_0 = arith.constant 0 : i32
    %c0_i32_1 = arith.constant 0 : i32
    return %c0_i32, %c0_i32_0 : i32, i32
  }
  func.func @transform_3(%arg0: i32) -> (i32, i32) {
    %c0_i32 = arith.constant 0 : i32
    %c0_i32_0 = arith.constant 0 : i32
    %c0_i32_1 = arith.constant 0 : i32
    return %c0_i32, %c0_i32_0 : i32, i32
  }
  func.func @transform_4(%arg0: i32) -> (i32, i32) {
    %c0_i32 = arith.constant 0 : i32
    %c0_i32_0 = arith.constant 0 : i32
    %c0_i32_1 = arith.constant 0 : i32
    return %c0_i32, %c0_i32_0 : i32, i32
  }
  func.func @transform_5(%arg0: i32) -> (i32, i32, i32) {
    %c0_i32 = arith.constant 0 : i32
    %c0_i32_0 = arith.constant 0 : i32
    %c0_i32_1 = arith.constant 0 : i32
    return %arg0, %c0_i32, %c0_i32_0 : i32, i32, i32
  }
}

</mosaic_0001>

<bundles_post_ra>
// kernel: diffusion_conv1d_block.1
= control target key start
LH: loop header
LB: loop body
LE: loop exit
PB: predicated region body
PF: predicated region fallthrough
CT: control target
= control target key end

     0   :  { %10 = vsyncpa [#allocation3], 0  ;;  %s1446_s0 = inlined_call_operand.vmem [shape: f32[2,24,4], index: 0, kind: input, shape index: {}]   ;;  %s1447_s1 = inlined_call_operand.vmem [shape: f32[3,4,16], index: 1, kind: input, shape index: {}]   ;;  %s1448_s2 = inlined_call_operand.vmem [shape: f32[3,16], index: 2, kind: input, shape index: {}]   ;;  %s1449_s3 = inlined_call_operand.vmem [shape: f32[16,8], index: 3, kind: input, shape index: {}]   ;;  %s1450_s4 = inlined_call_operand.vmem [shape: f32[8,16], index: 4, kind: input, shape index: {}]   ;;  %s1451_s5 = inlined_call_operand.hbm [shape: f32[2,16,16], index: 5, kind: output, shape index: {}]  }
   0x1   :  { %12 = vsyncpa [#allocation3 + $0x1], 0  ;;  %s1295_s18 = smov 0   ;;  %s1297_s19 = smov 0  }
   0x2   :  { %s1299_s20 = smov 0   ;;  %s1301_s21 = smov 0  }
   0x3 LB: > { %s1316_s22 = sadd.s32 4294967295, %s1258_s21   ;;  %s1047_s23 = sadd.s32 4294967294, %s1258_s21   ;;  %s1258_s21 = sphi %s1301_s21, %s1457_s21   ;;  %s1254_s20 = sphi %s1299_s20, %s1456_s20   ;;  %s1250_s19 = sphi %s1297_s19, %s1455_s19   ;;  %s1246_s18 = sphi %s1295_s18, %s1454_s18  }
   0x4   : > { %s1320_s24 = sadd.s32 1, %s1258_s21   ;;  %s135_s25 = sadd.s32 1, %s1254_s20 }
   0x5   : > { %s132_s26 = ssub.s32 %s1258_s21, %s1320_s24  ;;  %p145_p0 = scmp.ne.s32.totalorder %s1254_s20, %s1250_s19 }
   0x6   : > { %p133_p1 = scmp.eq.s32.totalorder %s132_s26, 0  ;;  %p146_p2 = scmp.eq.s32.totalorder %s1316_s22, 1 }
   0x7   : > { %p151_p3 = scmp.ne.s32.totalorder %s1250_s19, %s1246_s18  ;;  %p152_p4 = scmp.eq.s32.totalorder %s1047_s23, 1 }
   0x8   : > { %s1331_s27 = scalar_select %p133_p1, %s1254_s20, %s135_s25  }
   0x9   : > { %p1333_p5 = por %p146_p2, %p145_p0  ;;  %p1337_p6 = por %p152_p4, %p151_p3 }
   0xa   : > { %p1050_p7 = scmp.ge.s32.totalorder %s1258_s21, 1  ;;  %p190_p8 = scmp.lt.s32.totalorder %s1258_s21, 3 }
   0xc   : > { %p191_p9 = pnand %p1050_p7, %p190_p8 }
   0xd   : > { %p218_p10 = scmp.lt.s32.totalorder (!%p191_p9), %s1316_s22, 1  ;;  %s1075_s16 = sshll.u32 (!%p191_p9), %s1316_s22, 8 }
   0xe   : > { %194 = sbr.rel (%p191_p9) target bundleno = 1259 (0x4eb), region = 40  ;;  %s1403_s25 = scalar_lea.hbm (!%p191_p9), %s1451_s5, %s1075_s16 }
  0x13   : > { %v1053_v0 = vld [vmem:[%s1447_s1 + $0x4] sm:$0xf]  ;;  %vm237_vm0 = vcmask 1043456   ;;  %v225_v1 = vld [vmem:[%s1447_s1] sm:$0xf]  ;;  %s219_s11 = scalar_select %p218_p10, %s1316_s22, 1  ;;  %v730_v40 = vlaneseq }
  0x14   : > { %1098 = vmatprep.subr.msk.mxu0 %vm237_vm0, %v1053_v0  ;;  %1103 = vmatprep.subr.msk.mxu1 %vm237_vm0, %v225_v1  ;;  %v1060_v2 = vld [vmem:[%s1447_s1 + $0x8] sm:$0xf]  ;;  %vm230_vm1 = vcmask 31744   ;;  %v1260_v9 = vmov 0.0   ;;  %v493_v11 = vld [vmem:[%s1449_s3] sm:$0xff]  ;;  %vm496_vm2 = vcmask 130048  }
  0x15   : > { %1099 = vmatpush3.msk.msra.mxu0 %vm237_vm0, %v1053_v0  ;;  %1104 = vmatpush3.msk.msra.mxu1 %vm237_vm0, %v225_v1  ;;  %s1144_s12 = smul.u32 24, %s219_s11  ;;  %v494_v10 = vld [vmem:[%s1449_s3 + $0x8] sm:$0xff]  ;;  %vm1261_vm3 = vmmov 0   ;;  %v490_v12 = vld [vmem:[%s1448_s2] sm:$0x1]  ;;  %vm655_vm4 = vcmask 64512  }
  0x16   : > { %1108 = vmatprep.subr.msk.mxu0 %vm237_vm0, %v1060_v2  ;;  %1113 = vmatprep.subr.mxu1 %v1260_v9  ;;  %v495_v34 = vld [vmem:[%s1450_s4] sm:$0xff]  ;;  %v731_v41 = vshrl.u32 %v730_v40, 7  ;;  %s1262_s22 = smov [#allocation2]  }
  0x17   : > { %s222_s15 = scalar_lea.vmem %s1446_s0, %s1144_s12  ;;  %v491_v1 = vld [vmem:[%s1448_s2 + $0x1] sm:$0x1]  ;;  %s215_s12 = sand.u32 1, %s1250_s19  }
  0x18   : > { %v226_v3 = vld [vmem:[%s222_s15 + $0x1] sm:$0xff]  ;;  %v227_v5 = vld [vmem:[%s222_s15 + $0x9] sm:$0xff]  ;;  %v732_v42 = vsub.s32 0, %v731_v41  ;;  %s1051_s13 = sshll.u32 %s215_s12, 4  ;;  %s1406_s26 = scalar_lea.sflag [#allocation3], %s215_s12 }
  0x19   : > { %v223_v4 = vld [vmem:[%s222_s15] sm:$0xff]  ;;  %1100 = vmatprep.mubr.msk.f32.mxu0 %vm230_vm1, %v226_v3  ;;  %v224_v6 = vld [vmem:[%s222_s15 + $0x8] sm:$0xff]  ;;  %s217_s14 = scalar_lea.vmem [#allocation2], %s1051_s13  ;;  %s1202_s6 = sshll.u32 %s1262_s22, 4  ;;  %s1203_s6 = int_to_ptr.vmem [resolvable:$false] %s1202_s6 }
  0x1a   : > { %1105 = vmatprep.mubr.msk.f32.mxu1 %vm230_vm1, %v223_v4  ;;  %v400_v7 = vld [vmem:[%s222_s15 + $0x2] sm:$0xff]  ;;  %1101 = vmatmul.mubr.msk.f32.vlgmr.msra.gmra.mxu0 %vm230_vm1, %v227_v5  ;;  %v401_v8 = vld [vmem:[%s222_s15 + $0xa] sm:$0xff]  ;;  %s985_s15 = sshll.u32 %s217_s14, 4  ;;  %s1204_s7 = scalar_lea.vmem %s1203_s6, 512  ;;  %s1398_s15 = int_to_ptr.vmem [resolvable:$true] %s985_s15 }
  0x1b   : > { %1106 = vmatmul.mubr.msk.f32.vlgmr.msra.gmra.mxu1 %vm230_vm1, %v224_v6  ;;  %1109 = vmatpush3.msk.msra.mxu0 %vm237_vm0, %v1060_v2  ;;  %v1069_v6 = vld [vmem:[%s1448_s2 + $0x2] ss:$0 sm:$0xff]  ;;  %s1198_s30 = scalar_lea.vmem %s1398_s15, 256  ;;  %p1205_p0 = scmp.lt.s32.totalorder %s1398_s15, %s1203_s6 }
  0x1c   : > { %1110 = vmatprep.mubr.msk.f32.mxu0 %vm230_vm1, %v400_v7  ;;  %1120 = vmatprep.subr.mxu0 %v1260_v9  ;;  %p1199_p11 = scmp.ne.s32.totalorder %s1398_s15, %s1198_s30  ;;  %p1206_p1 = scmp.lt.s32.totalorder %s1204_s7, %s1198_s30 }
  0x1d   : > { %1114 = vmatpush3.msra.mxu1 %v494_v10  ;;  %1117 = vmatprep.mubr.msk.f32.mxu1 %vm1261_vm3, %v1260_v9 }
  0x1e   : > { %1111 = vmatmul.mubr.msk.f32.vlgmr.msra.gmra.mxu0 %vm230_vm1, %v401_v8  ;;  %1115 = vmatprep.subr.mxu1 %v1260_v9  ;;  %p1200_p12 = pnand %p1199_p11, %p1333_p5  ;;  %p1207_p2 = por %p1206_p1, %p1205_p0 }
  0x1f   : > { %1121 = vmatpush3.msra.mxu0 %v494_v10  ;;  %1116 = vmatpush3.msra.mxu1 %v493_v11 }
  0x20   : > { %1122 = vmatprep.subr.mxu0 %v1260_v9  ;;  %1118 = vmatmul.mubr.msk.f32.vlgmr.msra.gmra.mxu1 %vm496_vm2, %v490_v12  ;;  %p1201_p13 = pneg %p1200_p12 }
  0x21   : > { %1123 = vmatpush3.msra.mxu0 %v493_v11  ;;  %1124 = vmatprep.mubr.msk.f32.mxu0 %vm1261_vm3, %v1260_v9 }
  0x22   : > { %1127 = vmatprep.subr.mxu1 %v1260_v9  ;;  %1129 = vmatprep.mubr.msk.f32.mxu1 %vm1261_vm3, %v1260_v9  ;;  %p1208_p3 = pnand %p1207_p2, %p1201_p13 }
  0x23   : > { %1132 = vmatprep.subr.mxu0 %v1260_v9  ;;  %1128 = vmatpush3.msra.mxu1 %v495_v34 }
  0x24   : > { %1139 = vmatprep.subr.mxu1 %v1260_v9 }
  0xda   : > { %v1102_v13 = vpop.f32.mrf.mxu0 }
  0xdb   : > { %v1107_v14 = vpop.f32.mrf.mxu1 }
  0xdc   : > { %v307_v15 = vpop.f32.mrf.mxu0  ;;  %v397_v17 = vadd.f32 %v1107_v14, %v1102_v13 }
  0xdd   : > { %v391_v16 = vpop.f32.mrf.mxu1 }
  0xde   : > { %v1112_v18 = vpop.f32.mrf.mxu0  ;;  %v392_v19 = vadd.f32 %v391_v16, %v307_v15 }
  0xdf   : > { %v489_v20 = vadd.f32 %v1112_v18, %v397_v17 }
  0xe0   : > { %v479_v21 = vpop.f32.mrf.mxu0  ;;  %v575_v32 = vpop.f32.mrf.mxu1 }
  0xe1   : > { %v488_v22 = vadd.f32 %v479_v21, %v392_v19  ;;  %v498_v23 = vsel %vm496_vm2, %v489_v20, 0.0  ;;  %v579_v35 = vmul.f32 16.0, %v575_v32 }
  0xe2   : > { %v1119_v33 = vpop.f32.mrf.mxu1 }
  0xe3   : > { %v497_v24 = vsel %vm496_vm2, %v488_v22, 0.0 }
  0xe4   : > { %v499_v25 = vadd.f32 %v498_v23, %v497_v24 }
  0xe6   : > { %v500_v26 = vrot.slane %v499_v25, 4 }
  0xe8   : > { %v501_v27 = vadd.f32 %v500_v26, %v499_v25 }
  0xea   : > { %v502_v28 = vrot.slane %v501_v27, 2 }
  0xec   : > { %v503_v29 = vadd.f32 %v502_v28, %v501_v27 }
  0xee   : > { %v504_v30 = vrot.slane %v503_v29, 1 }
  0xf0   : > { %v505_v31 = vadd.f32 %v504_v30, %v503_v29 }
  0xf2   : > { %1125 = vmatmul.mubr.msk.f32.vlgmr.msra.gmra.mxu0 %vm496_vm2, %v505_v31 }
  0xf3   : > { %1133 = vmatpush3.msra.mxu0 %v494_v10  ;;  %1136 = vmatprep.mubr.msk.f32.mxu0 %vm1261_vm3, %v1260_v9 }
  0xf4   : > { %1134 = vmatprep.subr.mxu0 %v1260_v9 }
  0xf5   : > { %1135 = vmatpush3.msra.mxu0 %v493_v11 }
 0x1b2   : > { %v649_v36 = vpop.f32.mrf.mxu0 }
 0x1b3   : > { %v650_v37 = vadd.f32 %v649_v36, %v579_v35 }
 0x1b4   : > { %v1126_v38 = vpop.f32.mrf.mxu0 }
 0x1b5   : > { %v654_v39 = vmul.f32 0.03125, %v650_v37 }
 0x1b7   : > { %1130 = vmatmul.mubr.msk.f32.vlgmr.msra.gmra.mxu1 %vm655_vm4, %v654_v39 }
 0x1b8   : > { %1140 = vmatpush3.msra.mxu1 %v495_v34  ;;  %1141 = vmatprep.mubr.msk.f32.mxu1 %vm1261_vm3, %v1260_v9 }
 0x277   : > { %v725_v43 = vpop.f32.mrf.mxu1 }
 0x278   : > { %v729_v44 = vsub.f32 %v490_v12, %v725_v43 }
 0x279   : > { %v1131_v45 = vpop.f32.mrf.mxu1 }
 0x27a   : > { %v733_v46 = vrot.slane %v729_v44, %v732_v42 }
 0x27c   : > { %v734_v47 = vadd.f32 %v733_v46, %v488_v22  ;;  %v735_v48 = vadd.f32 %v733_v46, %v489_v20 }
 0x27e   : > { %v736_v49 = vmul.f32 %v734_v47, %v734_v47  ;;  %v737_v50 = vmul.f32 %v735_v48, %v735_v48 }
 0x280   : > { %v738_v51 = vsel %vm496_vm2, %v736_v49, 0.0  ;;  %v739_v52 = vsel %vm496_vm2, %v737_v50, 0.0 }
 0x281   : > { %v740_v53 = vadd.f32 %v739_v52, %v738_v51 }
 0x283   : > { %v741_v54 = vrot.slane %v740_v53, 4 }
 0x285   : > { %v742_v55 = vadd.f32 %v741_v54, %v740_v53 }
 0x287   : > { %v743_v56 = vrot.slane %v742_v55, 2 }
 0x289   : > { %v744_v57 = vadd.f32 %v743_v56, %v742_v55 }
 0x28b   : > { %v745_v58 = vrot.slane %v744_v57, 1 }
 0x28d   : > { %v746_v59 = vadd.f32 %v745_v58, %v744_v57 }
 0x28f   : > { %1137 = vmatmul.mubr.msk.f32.vlgmr.msra.gmra.mxu0 %vm496_vm2, %v746_v59 }
 0x34f   : > { %v816_v60 = vpop.f32.mrf.mxu0 }
 0x350   : > { %v820_v61 = vmul.f32 0.03125, %v816_v60 }
 0x351   : > { %v1138_v62 = vpop.f32.mrf.mxu0 }
 0x352   : > { %v821_v63 = vadd.f32 1e-05, %v820_v61 }
 0x354   : > { %1188 = vrsqrt.f32 %v821_v63 }
 0x361   : > { %v1189_v0 = vpop.eup %1188 }
 0x362   : > { %1142 = vmatmul.mubr.msk.f32.vlgmr.msra.gmra.mxu1 %vm655_vm4, %v1189_v0 }
 0x422   : > { %v892_v2 = vpop.f32.mrf.mxu1 }
 0x423   : > { %v896_v3 = vmul.f32 %v892_v2, %v491_v1 }
 0x424   : > { %v1143_v4 = vpop.f32.mrf.mxu1 }
 0x425   : > { %v900_v5 = vrot.slane %v896_v3, %v732_v42 }
 0x427   : > { %v901_v7 = vmul.f32 %v900_v5, %v734_v47  ;;  %v902_v8 = vmul.f32 %v900_v5, %v735_v48 }
 0x429   : > { %v907_v9 = vadd.f32 %v1069_v6, %v901_v7  ;;  %v908_v10 = vadd.f32 %v1069_v6, %v902_v8 }
 0x42b   : > { %v909_v11 = vmin.f32 %v907_v9, 20.0  ;;  %v910_v12 = vmin.f32 %v908_v10, 20.0  ;;  %vm929_vm5 = vcmp.gt.f32.partialorder %v907_v9, 20.0  ;;  %vm930_vm6 = vcmp.gt.f32.partialorder %v908_v10, 20.0 }
 0x42d   : > { %v911_v13 = vmul.f32 1.442695, %v909_v11  ;;  %v913_v14 = vmul.f32 1.442695, %v910_v12 }
 0x42f   : > { %1190 = vpow2.f32 %v911_v13 }
 0x430   : > { %1192 = vpow2.f32 %v913_v14 }
 0x43c   : > { %v1191_v15 = vpop.eup %1190 }
 0x43d   : > { %v1193_v16 = vpop.eup %1192  ;;  %v915_v17 = vadd.f32 2.0, %v1191_v15 }
 0x43e   : > { %v916_v18 = vadd.f32 2.0, %v1193_v16 }
 0x43f   : > { %v917_v19 = vmul.f32 %v1191_v15, %v915_v17 }
 0x440   : > { %v918_v20 = vmul.f32 %v1193_v16, %v916_v18 }
 0x441   : > { %v919_v21 = vadd.f32 2.0, %v917_v19 }
 0x442   : > { %v920_v22 = vadd.f32 2.0, %v918_v20 }
 0x443   : > { %1194 = vrcp.f32 %v919_v21 }
 0x444   : > { %1196 = vrcp.f32 %v920_v22 }
 0x450   : > { %v1195_v23 = vpop.eup %1194 }
 0x451   : > { %v1197_v24 = vpop.eup %1196  ;;  %v923_v25 = vmul.f32 %v1195_v23, %v919_v21 }
 0x452   : > { %v924_v26 = vmul.f32 %v1197_v24, %v920_v22 }
 0x453   : > { %v925_v27 = vsub.f32 2.0, %v923_v25 }
 0x454   : > { %v926_v28 = vsub.f32 2.0, %v924_v26 }
 0x455   : > { %v927_v29 = vmul.f32 %v1195_v23, %v925_v27 }
 0x456   : > { %v928_v30 = vmul.f32 %v1197_v24, %v926_v28 }
 0x457   : > { %v931_v31 = vmul.f32 %v927_v29, %v917_v19 }
 0x458   : > { %v932_v32 = vmul.f32 %v928_v30, %v918_v20 }
 0x459   : > { %v933_v33 = vmul.f32 %v931_v31, %v907_v9 }
 0x45a   : > { %v934_v35 = vmul.f32 %v932_v32, %v908_v10 }
 0x45b   : > { %v935_v34 = vsel %vm929_vm5, %v907_v9, %v933_v33 }
 0x45c   : > { %937 = vxpose.xlu0.b32.start [1/2] (short) (narrow) %v935_v34, 16  ;;  %v936_v36 = vsel %vm930_vm6, %v908_v10, %v934_v35 }
 0x460   : > { %938 = vxpose.xlu0.b32.end [2/2] (short) (narrow) %v936_v36, 16 }
 0x4d8   : > { %v953_v37 = vpop.trf.xlu0 }
 0x4d9   : > { %969 = vst.msk [vmem:[%s217_s14] sm:$0xff] %vm496_vm2, %v953_v37 }
 0x4dc   : > { %v954_v38 = vpop.trf.xlu0 }
 0x4dd   : > { %970 = vst.msk [vmem:[%s217_s14 + $0x8] sm:$0xff] %vm496_vm2, %v954_v38 }
 0x4de   : > { %1211 = shalt.err (!%p1208_p3)
}
 0x4df   : > { %s1212_s8 = scalar_lea.hbm %s1403_s25, 256  ;;  %s1216_s11 = scalar_lea.hbm %s1451_s5, 512 }
 0x4e0   : > { %p1213_p4 = scmp.ne.s32.totalorder %s1403_s25, %s1212_s8  ;;  %p1217_p9 = scmp.lt.s32.totalorder %s1403_s25, %s1451_s5 }
 0x4e1   : > { %p1218_p10 = scmp.lt.s32.totalorder %s1216_s11, %s1212_s8 }
 0x4e2   : > { %p1214_p7 = pnand %p1213_p4, %p1333_p5 }
 0x4e3   : > { %p1219_p11 = por %p1218_p10, %p1217_p9 }
 0x4e4   : > { %p1215_p8 = pneg %p1214_p7 }
 0x4e6   : > { %p1220_p12 = pnand %p1219_p11, %p1215_p8 }
 0x4e8   : > { %1223 = shalt.err (!%p1220_p12)
}
 0x4e9   : > { %s1263_s14 = smov 128   ;;  %s1264_s16 = smov 8  }
 0x4ea   : > { %1145 = dma.vmem_to_hbm [thread:$0]  (%p1333_p5), %s1398_s15, 256, %s1403_s25, %s1406_s26, %s1263_s14, %s1263_s14, %s1264_s16  }
 0x4eb PF: > { %p1151_p13 = scmp.ge.s32.totalorder %s1258_s21, 2  ;;  %s1000_s17 = sand.u32 1, %s1246_s18  }
 0x4ec   : > { %s1001_s23 = scalar_lea.sflag [#allocation3], %s1000_s17 }
 0x4ed   : > { %p1148_p0 = pnand %p1151_p13, %p1337_p6 }
 0x4ef   : > { %p1149_p1 = pneg %p1148_p0 }
 0x4f1   : > { %1241 = dma.done.wait (%p1149_p1), %s1001_s23, 256  }
 0x4f2   : > { %1243 = vsyncadd (%p1149_p1), %s1001_s23, 4294967040  ;;  %p15_p2 = scmp.ge.s32.totalorder %s1320_s24, 4   ;;  %s1454_s18 = smov %s1250_s19 }
 0x4f3   : > { %s1455_s19 = smov %s1254_s20  ;;  %s1456_s20 = smov %s1331_s27 }
 0x4f4   : > { %s1457_s21 = smov %s1320_s24  ;;  %17 = sbr.rel (!%p15_p2) target bundleno = 3 (0x3), region = 77 }
 0x4f9   :  { %1006 = vsyncpa [#allocation3], 1 }
 0x4fa   :  { %1008 = vsyncpa [#allocation3 + $0x1], 1 }

</bundles_post_ra>
